<compile_context>
chip_gen: v7x
topology: tpu7x:2x2x1
jax: 0.10.0
libtpu: 0.0.40
codegen_flags: <defaults>
</compile_context>

<pallas_src>
import functools

import jax
import jax.numpy as jnp
import numpy as np
from jax import lax
from jax.experimental import pallas as pl
from jax.experimental.pallas import tpu as pltpu


def _round_up(x, m):
    return ((x + m - 1) // m) * m


def _vmem_budget_bytes():
    """Half of this generation's physical VMEM (64 MiB on v5e/v6e, 32 MiB on v7x)."""
    cap = 64 * 1024 * 1024                      # v7x-safe fallback
    try:
        cap = int(pltpu.get_tpu_info().vmem_capacity_bytes)
    except Exception:
        pass
    return max(cap // 2, 16 * 1024 * 1024)


# -----------------------------------------------------------------------------
# Fused kernel: per-phase lane-dense matmul rows with a fused bias epilogue.
# Grid = (phase, row_tile), both "parallel".
# -----------------------------------------------------------------------------
def _fused_phase_matmul_kernel(a_ref, w_ref, b_ref, o_ref):
    # a_ref: (TILE_M, Kc)  im2col rows of the current phase/row-tile
    # w_ref: (Kc, Co)      this phase's weight matrix
    # b_ref: (1, Co)       bias (f32)
    # o_ref: (TILE_M, Co)
    acc = jnp.dot(a_ref[...], w_ref[...], preferred_element_type=jnp.float32)
    o_ref[...] = (acc + b_ref[...]).astype(o_ref.dtype)


def _choose_tile_m(rows, kc, co, n_phases, itm_a, itm_o, budget):
    """Grow-then-shrink row tile: as large as VMEM allows, but always leaving
    >= 2 (and even) total grid steps so both v7x TensorCores are busy."""
    lane = lambda n: _round_up(max(n, 1), 128)      # in-VMEM lane padding

    def vmem_ws(tm):                                # double-buffered working set
        return (2 * tm * lane(kc) * itm_a           # A blocks
                + 2 * tm * lane(co) * itm_o         # output blocks
                + 2 * _round_up(kc, 8) * lane(co) * itm_a   # weight blocks
                + 2 * 8 * lane(co) * 4)             # bias blocks

    tile_m = _round_up(min(1024, _round_up(rows, 8)), 8)
    headroom = 4 * 1024 * 1024
    while tile_m > 8 and vmem_ws(tile_m) > budget - headroom:
        tile_m = _round_up(max(8, tile_m // 2), 8)

    steps = lambda tm: n_phases * ((rows + tm - 1) // tm)
    while tile_m > 8 and (steps(tile_m) < 2 or steps(tile_m) % 2 != 0):
        tile_m = _round_up(max(8, tile_m // 2), 8)
    return tile_m


def _fused_phase_matmul(patches, w_stack, b_vec, out_dtype, budget):
    """patches: (P, R, Kc); w_stack: (P, Kc, Co); b_vec: (Co,) f32.
    Returns (P, R, Co): per-phase  patches[p] @ w_stack[p] + b  in ONE pallas_call."""
    P, R, Kc = patches.shape
    _, _, Co = w_stack.shape
    itm_a = jnp.dtype(patches.dtype).itemsize
    itm_o = jnp.dtype(out_dtype).itemsize

    tile_m = _choose_tile_m(R, Kc, Co, P, itm_a, itm_o, budget)
    r_pad = _round_up(R, tile_m)
    if r_pad != R:
        patches = jnp.pad(patches, ((0, 0), (0, r_pad - R), (0, 0)))
    b2d = b_vec.astype(jnp.float32).reshape(1, Co)

    grid = (P, r_pad // tile_m)
    flops = 2 * P * r_pad * Kc * Co
    bytes_acc = int(patches.size * itm_a + w_stack.size * itm_a
                    + b2d.size * 4 + P * r_pad * Co * itm_o)

    out = pl.pallas_call(
        _fused_phase_matmul_kernel,
        out_shape=jax.ShapeDtypeStruct((P, r_pad, Co), out_dtype),
        grid=grid,
        in_specs=[
            # Full-extent (un-padded) Kc / Co last dims: no 128-lane zero fill in HBM.
            pl.BlockSpec((None, tile_m, Kc), lambda ph, r: (ph, r, 0)),
            pl.BlockSpec((None, Kc, Co), lambda ph, r: (ph, 0, 0)),
            pl.BlockSpec((1, Co), lambda ph, r: (0, 0)),
        ],
        out_specs=pl.BlockSpec((None, tile_m, Co), lambda ph, r: (ph, r, 0)),
        compiler_params=pltpu.CompilerParams(
            dimension_semantics=("parallel", "parallel"),
            vmem_limit_bytes=int(budget)),
        cost_estimate=pl.CostEstimate(
            flops=flops, transcendentals=0, bytes_accessed=bytes_acc),
    )(patches, w_stack, b2d)
    return out[:, :R, :]


# -----------------------------------------------------------------------------
# Stride-phase (sub-pixel) decomposition of conv_transpose2d.
# -----------------------------------------------------------------------------
def _phase_plan(in_size, k, s, p, d, out_size):
    """Per-output-phase plan along one spatial dim of conv_transpose.

    For output positions o = o0 + m*s (m in [0, n_out)):
        y[o] = sum_t  x[m + offsets[t]] * w[taps[t]]     (out-of-range x -> 0)
    Derived from the PyTorch index relation  o = i*s - p + kk*d .
    Returns (pad_lo, pad_hi, plans_sorted_by_o0, n_out_max, taps_max).
    """
    plans = []
    for ph in range(s):
        taps = [kk for kk in range(k) if (kk * d) % s == ph]
        o0 = (ph - p) % s
        n_out = len(range(o0, out_size, s))
        if not taps:
            plans.append((o0, n_out, [], []))
            continue
        j0 = (o0 + p - ph) // s
        offsets = [j0 - (kk * d - ph) // s for kk in taps]
        plans.append((o0, n_out, taps, offsets))
    plans.sort(key=lambda t: t[0])           # phase order == output-interleave order
    n_max = max(t[1] for t in plans)
    t_max = max(len(t[2]) for t in plans)
    pad_lo = max([0] + [-min(t[3]) for t in plans if t[3]])
    pad_hi = max([0] + [(n_max - 1) + max(t[3]) - (in_size - 1) for t in plans if t[3]])
    return pad_lo, pad_hi, plans, n_max, t_max


def conv_transpose2d_pallas(x, w, b, *, stride=1, padding=0, output_padding=0,
                            dilation=1, groups=1, compute_dtype=None):
    """x: (N, Ci, H, W) NCHW; w: (Ci, Co, K, K); b: (Co,). Returns NCHW output."""
    assert groups == 1  # TODO(synk): grouped transposed conv not implemented
    N, Ci, H, W_in = x.shape
    Ci_w, Co, KH, KW = w.shape
    assert Ci == Ci_w
    s, p, op, d = stride, padding, output_padding, dilation

    OH = (H - 1) * s - 2 * p + d * (KH - 1) + 1 + op
    OW = (W_in - 1) * s - 2 * p + d * (KW - 1) + 1 + op
    assert OH > 0 and OW > 0

    pad_t, pad_b_, plans_h, mh_max, th_max = _phase_plan(H, KH, s, p, d, OH)
    pad_l, pad_r, plans_w, mw_max, tw_max = _phase_plan(W_in, KW, s, p, d, OW)
    Kc = th_max * tw_max * Ci
    R = N * mh_max * mw_max

    x_nhwc = jnp.transpose(x, (0, 2, 3, 1))                     # (N, H, W, Ci)
    xp = jnp.pad(x_nhwc, ((0, 0), (pad_t, pad_b_), (pad_l, pad_r), (0, 0)))

    # Stack all phases: im2col rows (P, R, Kc) and weight matrices (P, Kc, Co).
    # Ragged tap counts are padded with zero-weight dummy taps so every phase
    # shares one uniform matmul; phases with no taps (gcd(d, s) > 1) then come
    # out as bias-only rows automatically.
    zeros_tap = jnp.zeros((N, mh_max, mw_max, Ci), x.dtype)
    zeros_w = jnp.zeros((Ci, Co), w.dtype)
    patch_list, wmat_list = [], []
    for (_, _, taps_h, offs_h) in plans_h:
        for (_, _, taps_w, offs_w) in plans_w:
            cols, wrows = [], []
            for a in range(th_max):
                for c in range(tw_max):
                    if a < len(taps_h) and c < len(taps_w):
                        r0 = offs_h[a] + pad_t
                        c0 = offs_w[c] + pad_l
                        cols.append(xp[:, r0:r0 + mh_max, c0:c0 + mw_max, :])
                        wrows.append(w[:, :, taps_h[a], taps_w[c]])
                    else:                                       # dummy tap
                        cols.append(zeros_tap)
                        wrows.append(zeros_w)
            patch_list.append(jnp.concatenate(cols, axis=-1).reshape(R, Kc))
            wmat_list.append(jnp.concatenate(wrows, axis=0))
    patches = jnp.stack(patch_list)                             # (P, R, Kc)
    w_stack = jnp.stack(wmat_list)                              # (P, Kc, Co)

    if compute_dtype is not None:       # bf16 operands -> full MXU rate on v6e/v7x
        patches = patches.astype(compute_dtype)
        w_stack = w_stack.astype(compute_dtype)

    budget = _vmem_budget_bytes()
    y_all = _fused_phase_matmul(patches, w_stack, b, x.dtype, budget)  # (P, R, Co)

    # ---- Output assembly ----------------------------------------------------
    if OH % s == 0 and OW % s == 0:
        # Fast path: phases interleave evenly -> ONE reshape/transpose, no
        # strided read-modify-write scatters and no bias-broadcast init.
        y = y_all.reshape(s, s, N, mh_max, mw_max, Co)
        y = jnp.transpose(y, (2, 3, 0, 4, 1, 5)).reshape(N, OH, OW, Co)
        return jnp.transpose(y, (0, 3, 1, 2))
    # Ragged fallback (odd output_padding / size combos): per-phase scatter.
    out = jnp.zeros((N, OH, OW, Co), x.dtype)
    p_idx = 0
    for (oh0, mh, _, _) in plans_h:
        for (ow0, mw, _, _) in plans_w:
            if mh > 0 and mw > 0:
                y_ph = y_all[p_idx].reshape(N, mh_max, mw_max, Co)[:, :mh, :mw, :]
                out = out.at[:, oh0::s, ow0::s, :].set(y_ph)
            p_idx += 1
    return jnp.transpose(out, (0, 3, 1, 2))


def conv_transpose2d_prior_forward(x, key, *, in_channels, out_channels,
                                   kernel_size, stride, padding, output_padding,
                                   dilation, bias=True, compute_dtype=None):
    """Deterministically 'sample' W and b from unit-Gaussian priors, then run the
    transposed conv (mirrors ConvTranspose2dPrior.forward with n_samples=1)."""
    kw_key, kb_key = jax.random.split(key)
    fan = in_channels * kernel_size * kernel_size
    W = jax.random.normal(
        kw_key, (in_channels, out_channels, kernel_size, kernel_size),
        jnp.float32) / np.sqrt(fan)
    if bias:
        b = jax.random.normal(kb_key, (out_channels,), jnp.float32) * 0.1
    else:
        b = jnp.zeros((out_channels,), jnp.float32)
    y = conv_transpose2d_pallas(
        x, W, b, stride=stride, padding=padding, output_padding=output_padding,
        dilation=dilation, groups=1, compute_dtype=compute_dtype)
    return y, W, b


def _reference_conv_transpose(x, w, b, *, stride, padding, output_padding, dilation):
    k = w.shape[2]
    pad_lo = dilation * (k - 1) - padding
    assert pad_lo >= 0  # restriction of this reference only, not of the kernel
    y = lax.conv_general_dilated(
        x, jnp.transpose(w, (1, 0, 2, 3))[:, :, ::-1, ::-1],
        window_strides=(1, 1),
        padding=[(pad_lo, pad_lo + output_padding)] * 2,
        lhs_dilation=(stride, stride),
        rhs_dilation=(dilation, dilation),
        dimension_numbers=("NCHW", "OIHW", "NCHW"))
    return y + b[None, :, None, None]


if __name__ == "__main__":
    N, Ci, H, W = 2, 4, 16, 16
    Co, K = 8, 3
    key = jax.random.PRNGKey(0)
    kx, kparams = jax.random.split(key)
    x = jax.random.normal(kx, (N, Ci, H, W), jnp.float32)

    configs = [
        dict(stride=2, padding=1, output_padding=1, dilation=1),  # classic 2x upsample
        dict(stride=1, padding=1, output_padding=0, dilation=1),  # stride-1 path
    ]
    for cfg in configs:
        fwd = jax.jit(functools.partial(
            conv_transpose2d_prior_forward,
            in_channels=Ci, out_channels=Co, kernel_size=K,
            stride=cfg["stride"], padding=cfg["padding"],
            output_padding=cfg["output_padding"], dilation=cfg["dilation"],
            bias=True))
        y, Wp, bp = fwd(x, kparams)
        y = jax.block_until_ready(y)

        oh = ((H - 1) * cfg["stride"] - 2 * cfg["padding"]
              + cfg["dilation"] * (K - 1) + 1 + cfg["output_padding"])
        assert y.shape == (N, Co, oh, oh), (y.shape, cfg)
        ref = _reference_conv_transpose(x, Wp, bp, **cfg)
        np.testing.assert_allclose(np.asarray(y), np.asarray(ref),
                                   rtol=1e-4, atol=1e-4)

    # bf16 operands (f32 MXU accumulation): full MXU rate on v6e/v7x, half the
    # A/W DMA bytes; tolerance loosened accordingly.
    cfg = configs[0]
    fwd_bf16 = jax.jit(functools.partial(
        conv_transpose2d_prior_forward,
        in_channels=Ci, out_channels=Co, kernel_size=K,
        stride=cfg["stride"], padding=cfg["padding"],
        output_padding=cfg["output_padding"], dilation=cfg["dilation"],
        bias=True, compute_dtype=jnp.bfloat16))
    y16, Wp, bp = fwd_bf16(x, kparams)
    y16 = jax.block_until_ready(y16)
    ref = _reference_conv_transpose(x, Wp, bp, **cfg)
    np.testing.assert_allclose(np.asarray(y16), np.asarray(ref),
                               rtol=5e-2, atol=5e-2)

    print("KERNEL_OK")
</pallas_src>

<mosaic_0001>
module attributes {stable_mosaic.version = 11 : i64} {
  func.func @_fused_phase_matmul_kernel(%arg0: i32, %arg1: i32, %arg2: memref<1x512x16xf32, #tpu.memory_space<vmem>>, %arg3: memref<1x16x8xf32, #tpu.memory_space<vmem>>, %arg4: memref<1x8xf32, #tpu.memory_space<vmem>>, %arg5: memref<1x512x8xf32, #tpu.memory_space<vmem>>) attributes {dimension_semantics = [#tpu.dimension_semantics<parallel>, #tpu.dimension_semantics<parallel>], iteration_bounds = array<i64: 4, 1>, scalar_prefetch = 0 : i64, scratch_operands = 0 : i64, tpu.core_type = #tpu.core_type<tc>, window_params = [{transform_indices = @transform_0, window_bounds = array<i64: 1, 512, 16>}, {transform_indices = @transform_1, window_bounds = array<i64: 1, 16, 8>}, {pipeline_mode = #tpu.pipeline_mode<synchronous>, transform_indices = @transform_2, window_bounds = array<i64: 1, 8>}, {transform_indices = @transform_3, window_bounds = array<i64: 1, 512, 8>}]} {
    %c0 = arith.constant 0 : index
    %c0_0 = arith.constant 0 : index
    %c0_1 = arith.constant 0 : index
    %0 = vector.load %arg2[%c0, %c0_0, %c0_1] : memref<1x512x16xf32, #tpu.memory_space<vmem>>, vector<1x512x16xf32>
    %1 = vector.shape_cast %0 : vector<1x512x16xf32> to vector<512x16xf32>
    %c0_2 = arith.constant 0 : index
    %c0_3 = arith.constant 0 : index
    %c0_4 = arith.constant 0 : index
    %2 = vector.load %arg3[%c0_2, %c0_3, %c0_4] : memref<1x16x8xf32, #tpu.memory_space<vmem>>, vector<1x16x8xf32>
    %3 = vector.shape_cast %2 : vector<1x16x8xf32> to vector<16x8xf32>
    %cst = arith.constant dense<0.000000e+00> : vector<512x8xf32>
    %4 = tpu.matmul %1, %3, %cst {dimension_numbers = #tpu.dot_dimension_numbers<[1], [0], [0], [1], [0, 0, 1, 1], [], []>} : vector<512x16xf32>, vector<16x8xf32>, vector<512x8xf32> -> vector<512x8xf32>
    %c0_5 = arith.constant 0 : index
    %c0_6 = arith.constant 0 : index
    %5 = vector.load %arg4[%c0_5, %c0_6] : memref<1x8xf32, #tpu.memory_space<vmem>>, vector<1x8xf32>
    %6 = vector.broadcast %5 : vector<1x8xf32> to vector<512x8xf32>
    %7 = arith.addf %4, %6 : vector<512x8xf32>
    %c0_7 = arith.constant 0 : index
    %c0_8 = arith.constant 0 : index
    %c0_9 = arith.constant 0 : index
    %8 = vector.load %arg5[%c0_7, %c0_8, %c0_9] : memref<1x512x8xf32, #tpu.memory_space<vmem>>, vector<1x512x8xf32>
    %9 = vector.shape_cast %8 : vector<1x512x8xf32> to vector<512x8xf32>
    %10 = vector.shape_cast %7 : vector<512x8xf32> to vector<1x512x8xf32>
    tpu.vector_store %arg5[%c0_7, %c0_8, %c0_9], %10 {strides = array<i32>} : memref<1x512x8xf32, #tpu.memory_space<vmem>>, vector<1x512x8xf32>,
    return
  }
  func.func @transform_0(%arg0: i32, %arg1: i32) -> (i32, i32, i32) {
    %c0_i32 = arith.constant 0 : i32
    %c0_i32_0 = arith.constant 0 : i32
    return %arg0, %arg1, %c0_i32 : i32, i32, i32
  }
  func.func @transform_1(%arg0: i32, %arg1: i32) -> (i32, i32, i32) {
    %c0_i32 = arith.constant 0 : i32
    %c0_i32_0 = arith.constant 0 : i32
    %c0_i32_1 = arith.constant 0 : i32
    return %arg0, %c0_i32, %c0_i32_0 : i32, i32, i32
  }
  func.func @transform_2(%arg0: i32, %arg1: i32) -> (i32, i32) {
    %c0_i32 = arith.constant 0 : i32
    %c0_i32_0 = arith.constant 0 : i32
    %c0_i32_1 = arith.constant 0 : i32
    return %c0_i32, %c0_i32_0 : i32, i32
  }
  func.func @transform_3(%arg0: i32, %arg1: i32) -> (i32, i32, i32) {
    %c0_i32 = arith.constant 0 : i32
    %c0_i32_0 = arith.constant 0 : i32
    return %arg0, %arg1, %c0_i32 : i32, i32, i32
  }
}

</mosaic_0001>

<bundles_post_ra>
// kernel: conv_transpose2d_prior_forward.3
= control target key start
LH: loop header
LB: loop body
LE: loop exit
PB: predicated region body
PF: predicated region fallthrough
CT: control target
= control target key end

     0   :  { %s1366_s12 = smov 0   ;;  %s1368_s13 = smov 0   ;;  %s1739_s0 = inlined_call_operand.vmem [shape: f32[4,512,16], index: 0, kind: input, shape index: {}]   ;;  %s1740_s1 = inlined_call_operand.vmem [shape: f32[4,16,8], index: 1, kind: input, shape index: {}]   ;;  %s1741_s2 = inlined_call_operand.vmem [shape: f32[1,8], index: 2, kind: input, shape index: {}]   ;;  %s1742_s3 = inlined_call_operand.vmem [shape: f32[4,512,8], index: 3, kind: output, shape index: {}]  }
   0x1   :  { %s1370_s14 = smov 0  }
   0x2 LB: > { %s25_s15 = sadd.s32 1, %s1340_s13  ;;  %p1049_p0 = scmp.ge.s32.totalorder %s1344_s14, 1  ;;  %s1344_s14 = sphi %s1370_s14, %s13_s14   ;;  %s1340_s13 = sphi %s1368_s13, %s1744_s13   ;;  %s1336_s12 = sphi %s1366_s12, %s1743_s12  }
   0x3   : > { %p27_p1 = scmp.ge.s32.totalorder %s25_s15, 4  ;;  %p168_p2 = scmp.lt.s32.totalorder %s1344_s14, 5 }
   0x5   : > { %s1746_s15 = smov (%p27_p1, %s25_s15), 0  ;;  %p169_p3 = pnand %p1049_p0, %p168_p2 }
   0x6   : > { %p206_p4 = scmp.lt.s32.totalorder (!%p169_p3), %s1336_s12, 3  ;;  %vm303_vm0 = vcmask (!%p169_p3), 130048   ;;  %vm881_vm1 = vcmask (!%p169_p3), 64512  }
   0x7   : > { %172 = sbr.rel (%p169_p3) target bundleno = 301 (0x12d), region = 32 }
   0xe   : > { %s1748_s12 = smov (!%p206_p4, %s1336_s12), 3 }
   0xf   : > { %s1123_s16 = sshll.u32 %s1748_s12, 9  ;;  %s1124_s17 = sshll.u32 %s1748_s12, 4 }
  0x10   : > { %s1393_s20 = scalar_lea.vmem %s1739_s0, %s1123_s16  ;;  %s219_s23 = scalar_lea.vmem %s1740_s1, %s1124_s17 }
  0x11   : > { %v294_v0 = vld [vmem:[%s219_s23] sm:$0xff]  ;;  %v295_v1 = vld [vmem:[%s219_s23 + $0x8] sm:$0xff]  ;;  %v232_v7 = vld [vmem:[%s1393_s20 + $0x10] sm:$0xff]  ;;  %s1536_s28 = scalar_lea.vmem %s1742_s3, %s1123_s16 }
  0x12   : > { %v230_v2 = vld [vmem:[%s1393_s20] sm:$0xff]  ;;  %v1292_v3 = vpack.c.bf16 %v295_v1, %v294_v0  ;;  %v231_v5 = vld [vmem:[%s1393_s20 + $0x8] sm:$0xff]  ;;  %v264_v8 = vld [vmem:[%s1393_s20 + $0x110] sm:$0xff] }
  0x13   : > { %1196 = vmatprep.mubr.msk.f32.mxu0 %vm303_vm0, %v230_v2  ;;  %v262_v4 = vld [vmem:[%s1393_s20 + $0x100] sm:$0xff]  ;;  %v263_v6 = vld [vmem:[%s1393_s20 + $0x108] sm:$0xff]  ;;  %v233_v9 = vld [vmem:[%s1393_s20 + $0x18] sm:$0xff] }
  0x14   : > { %1244 = vmatprep.mubr.msk.f32.mxu1 %vm303_vm0, %v262_v4  ;;  %1293 = vmatprep.subr.bf16.mxu0 %v1292_v3  ;;  %v265_v10 = vld [vmem:[%s1393_s20 + $0x118] sm:$0xff]  ;;  %v234_v11 = vld [vmem:[%s1393_s20 + $0x20] sm:$0xff]  ;;  %v235_v13 = vld [vmem:[%s1393_s20 + $0x28] sm:$0xff] }
  0x15   : > { %1296 = vmatprep.subr.bf16.mxu1 %v1292_v3  ;;  %1295 = vmatpush3.bf16.msra.mxu0 %v1292_v3  ;;  %v266_v12 = vld [vmem:[%s1393_s20 + $0x120] sm:$0xff]  ;;  %v267_v14 = vld [vmem:[%s1393_s20 + $0x128] sm:$0xff]  ;;  %v236_v15 = vld [vmem:[%s1393_s20 + $0x30] sm:$0xff] }
  0x16   : > { %1297 = vmatpush3.bf16.msra.mxu1 %v1292_v3  ;;  %v268_v16 = vld [vmem:[%s1393_s20 + $0x130] sm:$0xff]  ;;  %v237_v17 = vld [vmem:[%s1393_s20 + $0x38] sm:$0xff]  ;;  %v238_v19 = vld [vmem:[%s1393_s20 + $0x40] sm:$0xff] }
  0x17   : > { %v269_v18 = vld [vmem:[%s1393_s20 + $0x138] sm:$0xff]  ;;  %v270_v20 = vld [vmem:[%s1393_s20 + $0x140] sm:$0xff]  ;;  %v239_v21 = vld [vmem:[%s1393_s20 + $0x48] sm:$0xff] }
  0x18   : > { %1197 = vmatmul.mubr.msk.f32.vlgmr.msra.gmra.mrb[0].mxu0 %vm303_vm0, %v231_v5  ;;  %v271_v22 = vld [vmem:[%s1393_s20 + $0x148] sm:$0xff]  ;;  %v240_v23 = vld [vmem:[%s1393_s20 + $0x50] sm:$0xff]  ;;  %v241_v25 = vld [vmem:[%s1393_s20 + $0x58] sm:$0xff] }
  0x19   : > { %1245 = vmatmul.mubr.msk.f32.vlgmr.msra.gmra.mrb[0].mxu1 %vm303_vm0, %v263_v6  ;;  %1199 = vmatprep.mubr.msk.f32.mxu0 %vm303_vm0, %v232_v7  ;;  %v272_v24 = vld [vmem:[%s1393_s20 + $0x150] sm:$0xff]  ;;  %v273_v26 = vld [vmem:[%s1393_s20 + $0x158] sm:$0xff]  ;;  %v242_v27 = vld [vmem:[%s1393_s20 + $0x60] sm:$0xff] }
  0x1a   : > { %1247 = vmatprep.mubr.msk.f32.mxu1 %vm303_vm0, %v264_v8  ;;  %v274_v28 = vld [vmem:[%s1393_s20 + $0x160] sm:$0xff]  ;;  %v243_v29 = vld [vmem:[%s1393_s20 + $0x68] sm:$0xff]  ;;  %v244_v31 = vld [vmem:[%s1393_s20 + $0x70] sm:$0xff] }
  0x1b   : > { %v275_v30 = vld [vmem:[%s1393_s20 + $0x168] sm:$0xff]  ;;  %v276_v32 = vld [vmem:[%s1393_s20 + $0x170] sm:$0xff]  ;;  %v245_v33 = vld [vmem:[%s1393_s20 + $0x78] sm:$0xff] }
  0x1c   : > { %1200 = vmatmul.mubr.msk.f32.gmra.mrb[2].mxu0 %vm303_vm0, %v233_v9  ;;  %v277_v34 = vld [vmem:[%s1393_s20 + $0x178] sm:$0xff]  ;;  %v246_v35 = vld [vmem:[%s1393_s20 + $0x80] sm:$0xff]  ;;  %v247_v37 = vld [vmem:[%s1393_s20 + $0x88] sm:$0xff] }
  0x1d   : > { %1248 = vmatmul.mubr.msk.f32.gmra.mrb[2].mxu1 %vm303_vm0, %v265_v10  ;;  %1202 = vmatprep.mubr.msk.f32.mxu0 %vm303_vm0, %v234_v11  ;;  %v278_v36 = vld [vmem:[%s1393_s20 + $0x180] sm:$0xff]  ;;  %v279_v38 = vld [vmem:[%s1393_s20 + $0x188] sm:$0xff]  ;;  %v248_v39 = vld [vmem:[%s1393_s20 + $0x90] sm:$0xff] }
  0x1e   : > { %1250 = vmatprep.mubr.msk.f32.mxu1 %vm303_vm0, %v266_v12  ;;  %v280_v40 = vld [vmem:[%s1393_s20 + $0x190] sm:$0xff]  ;;  %v249_v41 = vld [vmem:[%s1393_s20 + $0x98] sm:$0xff]  ;;  %v250_v43 = vld [vmem:[%s1393_s20 + $0xa0] sm:$0xff] }
  0x1f   : > { %v281_v42 = vld [vmem:[%s1393_s20 + $0x198] sm:$0xff]  ;;  %v282_v44 = vld [vmem:[%s1393_s20 + $0x1a0] sm:$0xff]  ;;  %v251_v45 = vld [vmem:[%s1393_s20 + $0xa8] sm:$0xff] }
  0x20   : > { %1203 = vmatmul.mubr.msk.f32.gmra.mrb[4].mxu0 %vm303_vm0, %v235_v13  ;;  %v283_v46 = vld [vmem:[%s1393_s20 + $0x1a8] sm:$0xff]  ;;  %v252_v47 = vld [vmem:[%s1393_s20 + $0xb0] sm:$0xff]  ;;  %v253_v49 = vld [vmem:[%s1393_s20 + $0xb8] sm:$0xff] }
  0x21   : > { %1251 = vmatmul.mubr.msk.f32.gmra.mrb[4].mxu1 %vm303_vm0, %v267_v14  ;;  %1205 = vmatprep.mubr.msk.f32.mxu0 %vm303_vm0, %v236_v15  ;;  %v284_v48 = vld [vmem:[%s1393_s20 + $0x1b0] sm:$0xff]  ;;  %v285_v50 = vld [vmem:[%s1393_s20 + $0x1b8] sm:$0xff]  ;;  %v254_v51 = vld [vmem:[%s1393_s20 + $0xc0] sm:$0xff] }
  0x22   : > { %1253 = vmatprep.mubr.msk.f32.mxu1 %vm303_vm0, %v268_v16  ;;  %v286_v52 = vld [vmem:[%s1393_s20 + $0x1c0] sm:$0xff]  ;;  %v255_v53 = vld [vmem:[%s1393_s20 + $0xc8] sm:$0xff]  ;;  %v256_v55 = vld [vmem:[%s1393_s20 + $0xd0] sm:$0xff] }
  0x23   : > { %v287_v54 = vld [vmem:[%s1393_s20 + $0x1c8] sm:$0xff]  ;;  %v288_v56 = vld [vmem:[%s1393_s20 + $0x1d0] sm:$0xff]  ;;  %v257_v57 = vld [vmem:[%s1393_s20 + $0xd8] sm:$0xff] }
  0x24   : > { %1206 = vmatmul.mubr.msk.f32.gmra.mrb[6].mxu0 %vm303_vm0, %v237_v17  ;;  %v289_v58 = vld [vmem:[%s1393_s20 + $0x1d8] sm:$0xff]  ;;  %v258_v59 = vld [vmem:[%s1393_s20 + $0xe0] sm:$0xff]  ;;  %v259_v61 = vld [vmem:[%s1393_s20 + $0xe8] sm:$0xff] }
  0x25   : > { %1254 = vmatmul.mubr.msk.f32.gmra.mrb[6].mxu1 %vm303_vm0, %v269_v18  ;;  %1208 = vmatprep.mubr.msk.f32.mxu0 %vm303_vm0, %v238_v19  ;;  %v290_v60 = vld [vmem:[%s1393_s20 + $0x1e0] sm:$0xff]  ;;  %v291_v62 = vld [vmem:[%s1393_s20 + $0x1e8] sm:$0xff]  ;;  %v260_v63 = vld [vmem:[%s1393_s20 + $0xf0] sm:$0xff] }
  0x26   : > { %1256 = vmatprep.mubr.msk.f32.mxu1 %vm303_vm0, %v270_v20  ;;  %v292_v0 = vld [vmem:[%s1393_s20 + $0x1f0] sm:$0xff]  ;;  %v261_v1 = vld [vmem:[%s1393_s20 + $0xf8] sm:$0xff]  ;;  %v1529_v3 = vld [vmem:[%s1741_s2] ss:$0 sm:$0xff] }
  0x27   : > { %v293_v2 = vld [vmem:[%s1393_s20 + $0x1f8] sm:$0xff] }
  0x28   : > { %1209 = vmatmul.mubr.msk.f32.gmra.mrb[8].mxu0 %vm303_vm0, %v239_v21 }
  0x29   : > { %1257 = vmatmul.mubr.msk.f32.gmra.mrb[8].mxu1 %vm303_vm0, %v271_v22  ;;  %1211 = vmatprep.mubr.msk.f32.mxu0 %vm303_vm0, %v240_v23 }
  0x2a   : > { %1259 = vmatprep.mubr.msk.f32.mxu1 %vm303_vm0, %v272_v24 }
  0x2c   : > { %1212 = vmatmul.mubr.msk.f32.gmra.mrb[10].mxu0 %vm303_vm0, %v241_v25 }
  0x2d   : > { %1260 = vmatmul.mubr.msk.f32.gmra.mrb[10].mxu1 %vm303_vm0, %v273_v26  ;;  %1214 = vmatprep.mubr.msk.f32.mxu0 %vm303_vm0, %v242_v27 }
  0x2e   : > { %1262 = vmatprep.mubr.msk.f32.mxu1 %vm303_vm0, %v274_v28 }
  0x30   : > { %1215 = vmatmul.mubr.msk.f32.gmra.mrb[12].mxu0 %vm303_vm0, %v243_v29 }
  0x31   : > { %1263 = vmatmul.mubr.msk.f32.gmra.mrb[12].mxu1 %vm303_vm0, %v275_v30  ;;  %1217 = vmatprep.mubr.msk.f32.mxu0 %vm303_vm0, %v244_v31 }
  0x32   : > { %1265 = vmatprep.mubr.msk.f32.mxu1 %vm303_vm0, %v276_v32 }
  0x34   : > { %1218 = vmatmul.mubr.msk.f32.gmra.mrb[14].mxu0 %vm303_vm0, %v245_v33 }
  0x35   : > { %1266 = vmatmul.mubr.msk.f32.gmra.mrb[14].mxu1 %vm303_vm0, %v277_v34  ;;  %1220 = vmatprep.mubr.msk.f32.mxu0 %vm303_vm0, %v246_v35 }
  0x36   : > { %1268 = vmatprep.mubr.msk.f32.mxu1 %vm303_vm0, %v278_v36 }
  0x38   : > { %1221 = vmatmul.mubr.msk.f32.gmra.mrb[16].mxu0 %vm303_vm0, %v247_v37 }
  0x39   : > { %1269 = vmatmul.mubr.msk.f32.gmra.mrb[16].mxu1 %vm303_vm0, %v279_v38  ;;  %1223 = vmatprep.mubr.msk.f32.mxu0 %vm303_vm0, %v248_v39 }
  0x3a   : > { %1271 = vmatprep.mubr.msk.f32.mxu1 %vm303_vm0, %v280_v40 }
  0x3c   : > { %1224 = vmatmul.mubr.msk.f32.gmra.mrb[18].mxu0 %vm303_vm0, %v249_v41 }
  0x3d   : > { %1272 = vmatmul.mubr.msk.f32.gmra.mrb[18].mxu1 %vm303_vm0, %v281_v42  ;;  %1226 = vmatprep.mubr.msk.f32.mxu0 %vm303_vm0, %v250_v43 }
  0x3e   : > { %1274 = vmatprep.mubr.msk.f32.mxu1 %vm303_vm0, %v282_v44 }
  0x40   : > { %1227 = vmatmul.mubr.msk.f32.gmra.mrb[20].mxu0 %vm303_vm0, %v251_v45 }
  0x41   : > { %1275 = vmatmul.mubr.msk.f32.gmra.mrb[20].mxu1 %vm303_vm0, %v283_v46  ;;  %1229 = vmatprep.mubr.msk.f32.mxu0 %vm303_vm0, %v252_v47 }
  0x42   : > { %1277 = vmatprep.mubr.msk.f32.mxu1 %vm303_vm0, %v284_v48 }
  0x44   : > { %1230 = vmatmul.mubr.msk.f32.gmra.mrb[22].mxu0 %vm303_vm0, %v253_v49 }
  0x45   : > { %1278 = vmatmul.mubr.msk.f32.gmra.mrb[22].mxu1 %vm303_vm0, %v285_v50  ;;  %1232 = vmatprep.mubr.msk.f32.mxu0 %vm303_vm0, %v254_v51 }
  0x46   : > { %1280 = vmatprep.mubr.msk.f32.mxu1 %vm303_vm0, %v286_v52 }
  0x48   : > { %1233 = vmatmul.mubr.msk.f32.gmra.mrb[24].mxu0 %vm303_vm0, %v255_v53 }
  0x49   : > { %1281 = vmatmul.mubr.msk.f32.gmra.mrb[24].mxu1 %vm303_vm0, %v287_v54  ;;  %1235 = vmatprep.mubr.msk.f32.mxu0 %vm303_vm0, %v256_v55 }
  0x4a   : > { %1283 = vmatprep.mubr.msk.f32.mxu1 %vm303_vm0, %v288_v56 }
  0x4c   : > { %1236 = vmatmul.mubr.msk.f32.gmra.mrb[26].mxu0 %vm303_vm0, %v257_v57 }
  0x4d   : > { %1284 = vmatmul.mubr.msk.f32.gmra.mrb[26].mxu1 %vm303_vm0, %v289_v58  ;;  %1238 = vmatprep.mubr.msk.f32.mxu0 %vm303_vm0, %v258_v59 }
  0x4e   : > { %1286 = vmatprep.mubr.msk.f32.mxu1 %vm303_vm0, %v290_v60 }
  0x50   : > { %1239 = vmatmul.mubr.msk.f32.gmra.mrb[28].mxu0 %vm303_vm0, %v259_v61 }
  0x51   : > { %1287 = vmatmul.mubr.msk.f32.gmra.mrb[28].mxu1 %vm303_vm0, %v291_v62  ;;  %1241 = vmatprep.mubr.msk.f32.mxu0 %vm303_vm0, %v260_v63 }
  0x52   : > { %1289 = vmatprep.mubr.msk.f32.mxu1 %vm303_vm0, %v292_v0 }
  0x54   : > { %1242 = vmatmul.mubr.msk.f32.gmra.mrb[30].mxu0 %vm303_vm0, %v261_v1 }
  0x55   : > { %1290 = vmatmul.mubr.msk.f32.gmra.mrb[30].mxu1 %vm303_vm0, %v293_v2 }
  0xeb   : > { %v1198_v4 = vpop.f32.mrb[0].mxu0 }
  0xec   : > { %v1246_v5 = vpop.f32.mrb[0].mxu1  ;;  %v568_v6 = vadd.f32 %v1198_v4, %v1529_v3  ;;  %v562_v8 = vpop.f32.mrb[1].mxu0 }
  0xed   : > { %v728_v7 = vadd.f32 %v1246_v5, %v1529_v3  ;;  %v722_v9 = vpop.f32.mrb[1].mxu1  ;;  %v563_v10 = vadd.f32 %v1529_v3, %v562_v8 }
  0xee   : > { %v723_v11 = vadd.f32 %v1529_v3, %v722_v9  ;;  %883 = vst.msk [vmem:[%s1536_s28 + $0x8] sm:$0xff] %vm881_vm1, %v568_v6 }
  0xef   : > { %915 = vst.msk [vmem:[%s1536_s28 + $0x108] sm:$0xff] %vm881_vm1, %v728_v7  ;;  %882 = vst.msk [vmem:[%s1536_s28] sm:$0xff] %vm881_vm1, %v563_v10  ;;  %v1201_v12 = vpop.f32.mrb[2].mxu0 }
  0xf0   : > { %914 = vst.msk [vmem:[%s1536_s28 + $0x100] sm:$0xff] %vm881_vm1, %v723_v11  ;;  %v1249_v13 = vpop.f32.mrb[2].mxu1  ;;  %v578_v14 = vadd.f32 %v1201_v12, %v1529_v3  ;;  %v572_v16 = vpop.f32.mrb[3].mxu0 }
  0xf1   : > { %v738_v15 = vadd.f32 %v1249_v13, %v1529_v3  ;;  %v732_v17 = vpop.f32.mrb[3].mxu1  ;;  %v573_v18 = vadd.f32 %v1529_v3, %v572_v16 }
  0xf2   : > { %v733_v19 = vadd.f32 %v1529_v3, %v732_v17  ;;  %885 = vst.msk [vmem:[%s1536_s28 + $0x18] sm:$0xff] %vm881_vm1, %v578_v14 }
  0xf3   : > { %917 = vst.msk [vmem:[%s1536_s28 + $0x118] sm:$0xff] %vm881_vm1, %v738_v15  ;;  %884 = vst.msk [vmem:[%s1536_s28 + $0x10] sm:$0xff] %vm881_vm1, %v573_v18  ;;  %v1204_v20 = vpop.f32.mrb[4].mxu0 }
  0xf4   : > { %916 = vst.msk [vmem:[%s1536_s28 + $0x110] sm:$0xff] %vm881_vm1, %v733_v19  ;;  %v1252_v21 = vpop.f32.mrb[4].mxu1  ;;  %v588_v22 = vadd.f32 %v1204_v20, %v1529_v3  ;;  %v582_v24 = vpop.f32.mrb[5].mxu0 }
  0xf5   : > { %v748_v23 = vadd.f32 %v1252_v21, %v1529_v3  ;;  %v742_v25 = vpop.f32.mrb[5].mxu1  ;;  %v583_v26 = vadd.f32 %v1529_v3, %v582_v24 }
  0xf6   : > { %v743_v27 = vadd.f32 %v1529_v3, %v742_v25  ;;  %887 = vst.msk [vmem:[%s1536_s28 + $0x28] sm:$0xff] %vm881_vm1, %v588_v22 }
  0xf7   : > { %919 = vst.msk [vmem:[%s1536_s28 + $0x128] sm:$0xff] %vm881_vm1, %v748_v23  ;;  %886 = vst.msk [vmem:[%s1536_s28 + $0x20] sm:$0xff] %vm881_vm1, %v583_v26  ;;  %v1207_v28 = vpop.f32.mrb[6].mxu0 }
  0xf8   : > { %918 = vst.msk [vmem:[%s1536_s28 + $0x120] sm:$0xff] %vm881_vm1, %v743_v27  ;;  %v1255_v29 = vpop.f32.mrb[6].mxu1  ;;  %v598_v30 = vadd.f32 %v1207_v28, %v1529_v3  ;;  %v592_v32 = vpop.f32.mrb[7].mxu0 }
  0xf9   : > { %v758_v31 = vadd.f32 %v1255_v29, %v1529_v3  ;;  %v752_v33 = vpop.f32.mrb[7].mxu1  ;;  %v593_v34 = vadd.f32 %v1529_v3, %v592_v32 }
  0xfa   : > { %v753_v35 = vadd.f32 %v1529_v3, %v752_v33  ;;  %889 = vst.msk [vmem:[%s1536_s28 + $0x38] sm:$0xff] %vm881_vm1, %v598_v30 }
  0xfb   : > { %921 = vst.msk [vmem:[%s1536_s28 + $0x138] sm:$0xff] %vm881_vm1, %v758_v31  ;;  %888 = vst.msk [vmem:[%s1536_s28 + $0x30] sm:$0xff] %vm881_vm1, %v593_v34  ;;  %v1210_v36 = vpop.f32.mrb[8].mxu0 }
  0xfc   : > { %920 = vst.msk [vmem:[%s1536_s28 + $0x130] sm:$0xff] %vm881_vm1, %v753_v35  ;;  %v1258_v37 = vpop.f32.mrb[8].mxu1  ;;  %v608_v38 = vadd.f32 %v1210_v36, %v1529_v3  ;;  %v602_v40 = vpop.f32.mrb[9].mxu0 }
  0xfd   : > { %v768_v39 = vadd.f32 %v1258_v37, %v1529_v3  ;;  %v762_v41 = vpop.f32.mrb[9].mxu1  ;;  %v603_v42 = vadd.f32 %v1529_v3, %v602_v40 }
  0xfe   : > { %v763_v43 = vadd.f32 %v1529_v3, %v762_v41  ;;  %891 = vst.msk [vmem:[%s1536_s28 + $0x48] sm:$0xff] %vm881_vm1, %v608_v38 }
  0xff   : > { %923 = vst.msk [vmem:[%s1536_s28 + $0x148] sm:$0xff] %vm881_vm1, %v768_v39  ;;  %890 = vst.msk [vmem:[%s1536_s28 + $0x40] sm:$0xff] %vm881_vm1, %v603_v42  ;;  %v1213_v44 = vpop.f32.mrb[10].mxu0 }
 0x100   : > { %922 = vst.msk [vmem:[%s1536_s28 + $0x140] sm:$0xff] %vm881_vm1, %v763_v43  ;;  %v1261_v45 = vpop.f32.mrb[10].mxu1  ;;  %v618_v46 = vadd.f32 %v1213_v44, %v1529_v3  ;;  %v612_v48 = vpop.f32.mrb[11].mxu0 }
 0x101   : > { %v778_v47 = vadd.f32 %v1261_v45, %v1529_v3  ;;  %v772_v49 = vpop.f32.mrb[11].mxu1  ;;  %v613_v50 = vadd.f32 %v1529_v3, %v612_v48 }
 0x102   : > { %v773_v51 = vadd.f32 %v1529_v3, %v772_v49  ;;  %893 = vst.msk [vmem:[%s1536_s28 + $0x58] sm:$0xff] %vm881_vm1, %v618_v46 }
 0x103   : > { %925 = vst.msk [vmem:[%s1536_s28 + $0x158] sm:$0xff] %vm881_vm1, %v778_v47  ;;  %892 = vst.msk [vmem:[%s1536_s28 + $0x50] sm:$0xff] %vm881_vm1, %v613_v50  ;;  %v1216_v52 = vpop.f32.mrb[12].mxu0 }
 0x104   : > { %924 = vst.msk [vmem:[%s1536_s28 + $0x150] sm:$0xff] %vm881_vm1, %v773_v51  ;;  %v1264_v53 = vpop.f32.mrb[12].mxu1  ;;  %v628_v54 = vadd.f32 %v1216_v52, %v1529_v3  ;;  %v622_v56 = vpop.f32.mrb[13].mxu0 }
 0x105   : > { %v788_v55 = vadd.f32 %v1264_v53, %v1529_v3  ;;  %v782_v57 = vpop.f32.mrb[13].mxu1  ;;  %v623_v58 = vadd.f32 %v1529_v3, %v622_v56 }
 0x106   : > { %v783_v59 = vadd.f32 %v1529_v3, %v782_v57  ;;  %895 = vst.msk [vmem:[%s1536_s28 + $0x68] sm:$0xff] %vm881_vm1, %v628_v54 }
 0x107   : > { %927 = vst.msk [vmem:[%s1536_s28 + $0x168] sm:$0xff] %vm881_vm1, %v788_v55  ;;  %894 = vst.msk [vmem:[%s1536_s28 + $0x60] sm:$0xff] %vm881_vm1, %v623_v58  ;;  %v1219_v60 = vpop.f32.mrb[14].mxu0 }
 0x108   : > { %926 = vst.msk [vmem:[%s1536_s28 + $0x160] sm:$0xff] %vm881_vm1, %v783_v59  ;;  %v1267_v61 = vpop.f32.mrb[14].mxu1  ;;  %v638_v62 = vadd.f32 %v1219_v60, %v1529_v3  ;;  %v632_v0 = vpop.f32.mrb[15].mxu0 }
 0x109   : > { %v798_v63 = vadd.f32 %v1267_v61, %v1529_v3  ;;  %v792_v1 = vpop.f32.mrb[15].mxu1  ;;  %v633_v2 = vadd.f32 %v1529_v3, %v632_v0 }
 0x10a   : > { %v793_v4 = vadd.f32 %v1529_v3, %v792_v1  ;;  %897 = vst.msk [vmem:[%s1536_s28 + $0x78] sm:$0xff] %vm881_vm1, %v638_v62 }
 0x10b   : > { %929 = vst.msk [vmem:[%s1536_s28 + $0x178] sm:$0xff] %vm881_vm1, %v798_v63  ;;  %896 = vst.msk [vmem:[%s1536_s28 + $0x70] sm:$0xff] %vm881_vm1, %v633_v2  ;;  %v1222_v5 = vpop.f32.mrb[16].mxu0 }
 0x10c   : > { %928 = vst.msk [vmem:[%s1536_s28 + $0x170] sm:$0xff] %vm881_vm1, %v793_v4  ;;  %v1270_v6 = vpop.f32.mrb[16].mxu1  ;;  %v648_v7 = vadd.f32 %v1222_v5, %v1529_v3  ;;  %v642_v9 = vpop.f32.mrb[17].mxu0 }
 0x10d   : > { %v808_v8 = vadd.f32 %v1270_v6, %v1529_v3  ;;  %v802_v10 = vpop.f32.mrb[17].mxu1  ;;  %v643_v11 = vadd.f32 %v1529_v3, %v642_v9 }
 0x10e   : > { %v803_v12 = vadd.f32 %v1529_v3, %v802_v10  ;;  %899 = vst.msk [vmem:[%s1536_s28 + $0x88] sm:$0xff] %vm881_vm1, %v648_v7 }
 0x10f   : > { %931 = vst.msk [vmem:[%s1536_s28 + $0x188] sm:$0xff] %vm881_vm1, %v808_v8  ;;  %898 = vst.msk [vmem:[%s1536_s28 + $0x80] sm:$0xff] %vm881_vm1, %v643_v11  ;;  %v1225_v13 = vpop.f32.mrb[18].mxu0 }
 0x110   : > { %930 = vst.msk [vmem:[%s1536_s28 + $0x180] sm:$0xff] %vm881_vm1, %v803_v12  ;;  %v1273_v14 = vpop.f32.mrb[18].mxu1  ;;  %v658_v15 = vadd.f32 %v1225_v13, %v1529_v3  ;;  %v652_v17 = vpop.f32.mrb[19].mxu0 }
 0x111   : > { %v818_v16 = vadd.f32 %v1273_v14, %v1529_v3  ;;  %v812_v18 = vpop.f32.mrb[19].mxu1  ;;  %v653_v19 = vadd.f32 %v1529_v3, %v652_v17 }
 0x112   : > { %v813_v20 = vadd.f32 %v1529_v3, %v812_v18  ;;  %901 = vst.msk [vmem:[%s1536_s28 + $0x98] sm:$0xff] %vm881_vm1, %v658_v15 }
 0x113   : > { %933 = vst.msk [vmem:[%s1536_s28 + $0x198] sm:$0xff] %vm881_vm1, %v818_v16  ;;  %900 = vst.msk [vmem:[%s1536_s28 + $0x90] sm:$0xff] %vm881_vm1, %v653_v19  ;;  %v1228_v21 = vpop.f32.mrb[20].mxu0 }
 0x114   : > { %932 = vst.msk [vmem:[%s1536_s28 + $0x190] sm:$0xff] %vm881_vm1, %v813_v20  ;;  %v1276_v22 = vpop.f32.mrb[20].mxu1  ;;  %v668_v23 = vadd.f32 %v1228_v21, %v1529_v3  ;;  %v662_v25 = vpop.f32.mrb[21].mxu0 }
 0x115   : > { %v828_v24 = vadd.f32 %v1276_v22, %v1529_v3  ;;  %v822_v26 = vpop.f32.mrb[21].mxu1  ;;  %v663_v27 = vadd.f32 %v1529_v3, %v662_v25 }
 0x116   : > { %v823_v28 = vadd.f32 %v1529_v3, %v822_v26  ;;  %903 = vst.msk [vmem:[%s1536_s28 + $0xa8] sm:$0xff] %vm881_vm1, %v668_v23 }
 0x117   : > { %935 = vst.msk [vmem:[%s1536_s28 + $0x1a8] sm:$0xff] %vm881_vm1, %v828_v24  ;;  %902 = vst.msk [vmem:[%s1536_s28 + $0xa0] sm:$0xff] %vm881_vm1, %v663_v27  ;;  %v1231_v29 = vpop.f32.mrb[22].mxu0 }
 0x118   : > { %934 = vst.msk [vmem:[%s1536_s28 + $0x1a0] sm:$0xff] %vm881_vm1, %v823_v28  ;;  %v1279_v30 = vpop.f32.mrb[22].mxu1  ;;  %v678_v31 = vadd.f32 %v1231_v29, %v1529_v3  ;;  %v672_v33 = vpop.f32.mrb[23].mxu0 }
 0x119   : > { %v838_v32 = vadd.f32 %v1279_v30, %v1529_v3  ;;  %v832_v34 = vpop.f32.mrb[23].mxu1  ;;  %v673_v35 = vadd.f32 %v1529_v3, %v672_v33 }
 0x11a   : > { %v833_v36 = vadd.f32 %v1529_v3, %v832_v34  ;;  %905 = vst.msk [vmem:[%s1536_s28 + $0xb8] sm:$0xff] %vm881_vm1, %v678_v31 }
 0x11b   : > { %937 = vst.msk [vmem:[%s1536_s28 + $0x1b8] sm:$0xff] %vm881_vm1, %v838_v32  ;;  %904 = vst.msk [vmem:[%s1536_s28 + $0xb0] sm:$0xff] %vm881_vm1, %v673_v35  ;;  %v1234_v37 = vpop.f32.mrb[24].mxu0 }
 0x11c   : > { %936 = vst.msk [vmem:[%s1536_s28 + $0x1b0] sm:$0xff] %vm881_vm1, %v833_v36  ;;  %v1282_v38 = vpop.f32.mrb[24].mxu1  ;;  %v688_v39 = vadd.f32 %v1234_v37, %v1529_v3  ;;  %v682_v41 = vpop.f32.mrb[25].mxu0 }
 0x11d   : > { %v848_v40 = vadd.f32 %v1282_v38, %v1529_v3  ;;  %v842_v42 = vpop.f32.mrb[25].mxu1  ;;  %v683_v43 = vadd.f32 %v1529_v3, %v682_v41 }
 0x11e   : > { %v843_v44 = vadd.f32 %v1529_v3, %v842_v42  ;;  %907 = vst.msk [vmem:[%s1536_s28 + $0xc8] sm:$0xff] %vm881_vm1, %v688_v39 }
 0x11f   : > { %939 = vst.msk [vmem:[%s1536_s28 + $0x1c8] sm:$0xff] %vm881_vm1, %v848_v40  ;;  %906 = vst.msk [vmem:[%s1536_s28 + $0xc0] sm:$0xff] %vm881_vm1, %v683_v43  ;;  %v1237_v45 = vpop.f32.mrb[26].mxu0 }
 0x120   : > { %938 = vst.msk [vmem:[%s1536_s28 + $0x1c0] sm:$0xff] %vm881_vm1, %v843_v44  ;;  %v1285_v46 = vpop.f32.mrb[26].mxu1  ;;  %v698_v47 = vadd.f32 %v1237_v45, %v1529_v3  ;;  %v692_v49 = vpop.f32.mrb[27].mxu0 }
 0x121   : > { %v858_v48 = vadd.f32 %v1285_v46, %v1529_v3  ;;  %v852_v50 = vpop.f32.mrb[27].mxu1  ;;  %v693_v51 = vadd.f32 %v1529_v3, %v692_v49 }
 0x122   : > { %v853_v52 = vadd.f32 %v1529_v3, %v852_v50  ;;  %909 = vst.msk [vmem:[%s1536_s28 + $0xd8] sm:$0xff] %vm881_vm1, %v698_v47 }
 0x123   : > { %941 = vst.msk [vmem:[%s1536_s28 + $0x1d8] sm:$0xff] %vm881_vm1, %v858_v48  ;;  %908 = vst.msk [vmem:[%s1536_s28 + $0xd0] sm:$0xff] %vm881_vm1, %v693_v51  ;;  %v1240_v53 = vpop.f32.mrb[28].mxu0 }
 0x124   : > { %940 = vst.msk [vmem:[%s1536_s28 + $0x1d0] sm:$0xff] %vm881_vm1, %v853_v52  ;;  %v1288_v54 = vpop.f32.mrb[28].mxu1  ;;  %v708_v55 = vadd.f32 %v1240_v53, %v1529_v3  ;;  %v702_v57 = vpop.f32.mrb[29].mxu0 }
 0x125   : > { %v868_v56 = vadd.f32 %v1288_v54, %v1529_v3  ;;  %v862_v58 = vpop.f32.mrb[29].mxu1  ;;  %v703_v59 = vadd.f32 %v1529_v3, %v702_v57 }
 0x126   : > { %v863_v60 = vadd.f32 %v1529_v3, %v862_v58  ;;  %911 = vst.msk [vmem:[%s1536_s28 + $0xe8] sm:$0xff] %vm881_vm1, %v708_v55 }
 0x127   : > { %943 = vst.msk [vmem:[%s1536_s28 + $0x1e8] sm:$0xff] %vm881_vm1, %v868_v56  ;;  %910 = vst.msk [vmem:[%s1536_s28 + $0xe0] sm:$0xff] %vm881_vm1, %v703_v59  ;;  %v1243_v61 = vpop.f32.mrb[30].mxu0 }
 0x128   : > { %942 = vst.msk [vmem:[%s1536_s28 + $0x1e0] sm:$0xff] %vm881_vm1, %v863_v60  ;;  %v1291_v62 = vpop.f32.mrb[30].mxu1  ;;  %v718_v63 = vadd.f32 %v1243_v61, %v1529_v3  ;;  %v712_v1 = vpop.f32.mrb[31].mxu0 }
 0x129   : > { %v878_v0 = vadd.f32 %v1291_v62, %v1529_v3  ;;  %v872_v2 = vpop.f32.mrb[31].mxu1  ;;  %v713_v4 = vadd.f32 %v1529_v3, %v712_v1 }
 0x12a   : > { %v873_v5 = vadd.f32 %v1529_v3, %v872_v2  ;;  %913 = vst.msk [vmem:[%s1536_s28 + $0xf8] sm:$0xff] %vm881_vm1, %v718_v63 }
 0x12b   : > { %945 = vst.msk [vmem:[%s1536_s28 + $0x1f8] sm:$0xff] %vm881_vm1, %v878_v0  ;;  %912 = vst.msk [vmem:[%s1536_s28 + $0xf0] sm:$0xff] %vm881_vm1, %v713_v4 }
 0x12c   : > { %944 = vst.msk [vmem:[%s1536_s28 + $0x1f0] sm:$0xff] %vm881_vm1, %v873_v5 }
 0x12d PF: > { %s13_s14 = sadd.s32 1, %s1344_s14   ;;  %s1743_s12 = smov %s1340_s13 }
 0x12e   : > { %p10_p5 = scmp.ge.s32.totalorder %s13_s14, 6   ;;  %s1744_s13 = smov %s1746_s15 }
 0x130   :  { %12 = sbr.rel (!%p10_p5) target bundleno = 2 (0x2), region = 65 }

</bundles_post_ra>
